<compile_context>
chip_gen: v7x
topology: tpu7x:2x2x1
jax: 0.10.0
libtpu: 0.0.40
codegen_flags: <defaults>
</compile_context>

<pallas_src>
import jax
import jax.numpy as jnp
import numpy as np
from jax import lax
from jax.experimental import pallas as pl
from jax.experimental.pallas import tpu as pltpu

_SMOOTH = 1e-05


def _dice_partials_kernel(inp_ref, tgt_ref, inter_ref, xsum_ref, tsum_ref):
    # inp_ref : (N, C, T)  native dtype (e.g. bf16)  -- class-probability tile
    # tgt_ref : (N, T)     int8/int16/int32          -- integer class labels tile
    # *_ref   : (1, N, C)  float32 partial sums, resident across the inner grid axis
    n, c, t = inp_ref.shape
    i = pl.program_id(1)

    @pl.when(i == 0)
    def _init():
        inter_ref[...] = jnp.zeros_like(inter_ref)
        xsum_ref[...] = jnp.zeros_like(xsum_ref)
        tsum_ref[...] = jnp.zeros_like(tsum_ref)

    x = inp_ref[...].astype(jnp.float32)                       # (N, C, T) f32
    labels = tgt_ref[...].astype(jnp.int32)                    # (N, T)
    class_ids = lax.broadcasted_iota(jnp.int32, (n, c, t), 1)  # varies along C
    mask = labels[:, None, :] == class_ids                     # (N, C, T) one-hot

    inter_ref[...] += jnp.sum(jnp.where(mask, x, 0.0), axis=-1)[None]
    xsum_ref[...] += jnp.sum(x, axis=-1)[None]
    tsum_ref[...] += jnp.sum(jnp.where(mask, 1.0, 0.0), axis=-1)[None]


def _choose_spatial_tile(hw, bytes_per_pos, budget_bytes):
    """Largest spatial tile (multiple of 128 dividing hw, or hw itself) under budget."""
    if hw <= 128 or hw * bytes_per_pos <= budget_bytes:
        return hw
    max_t = max(128, (budget_bytes // bytes_per_pos) // 128 * 128)
    t = min(max_t, (hw // 128) * 128)
    while t >= 128:
        if hw % t == 0:
            return t
        t -= 128
    return hw  # no 128-multiple divisor found; fall back to the full extent


def multiclass_dice(inp, target, weights=None, *, tile_budget_bytes=6 << 20):
    """Returns (mean_dice, per_class_dice) matching MultiClassDice.forward."""
    N, C, H, W = inp.shape
    if target.ndim == 4:                       # (N, 1, H, W) -> (N, H, W)
        target = target[:, 0]
    # Keep narrow integer label dtypes as-is (int8 recommended when C <= 127);
    # only normalize non-integer / 64-bit inputs.
    if (not jnp.issubdtype(target.dtype, jnp.integer)) or target.dtype.itemsize > 4:
        target = target.astype(jnp.int32)

    hw = H * W
    inp_flat = inp.reshape(N, C, hw)           # free reshape, lane-dense last dim
    tgt_flat = target.reshape(N, hw)

    bytes_per_pos = N * (C * inp_flat.dtype.itemsize + tgt_flat.dtype.itemsize)
    tile = _choose_spatial_tile(hw, bytes_per_pos, tile_budget_bytes)
    n_tiles = hw // tile
    n_outer = 1
    for d in (8, 4, 2):                        # megacore-friendly parallel outer split
        if n_tiles % d == 0:
            n_outer = d
            break
    n_inner = n_tiles // n_outer

    part_shape = jax.ShapeDtypeStruct((n_outer, N, C), jnp.float32)
    out_specs = tuple(
        pl.BlockSpec((1, N, C), lambda o, i: (o, 0, 0)) for _ in range(3)
    )

    cost = pl.CostEstimate(
        flops=5 * N * C * hw,
        transcendentals=0,
        bytes_accessed=(N * C * hw * inp_flat.dtype.itemsize
                        + N * hw * tgt_flat.dtype.itemsize
                        + 3 * n_outer * N * C * 4),
    )

    inter_p, xsum_p, tsum_p = pl.pallas_call(
        _dice_partials_kernel,
        out_shape=(part_shape, part_shape, part_shape),
        grid_spec=pltpu.PrefetchScalarGridSpec(
            num_scalar_prefetch=0,
            grid=(n_outer, n_inner),
            in_specs=[
                pl.BlockSpec((N, C, tile), lambda o, i: (0, 0, o * n_inner + i)),
                pl.BlockSpec((N, tile), lambda o, i: (0, o * n_inner + i)),
            ],
            out_specs=out_specs,
        ),
        compiler_params=pltpu.CompilerParams(
            dimension_semantics=("parallel", "arbitrary"),
            vmem_limit_bytes=48 << 20,
        ),
        cost_estimate=cost,
    )(inp_flat, tgt_flat)

    intersection = inter_p.sum(axis=0)         # (N, C)
    x_sum = xsum_p.sum(axis=0)                 # (N, C)
    t_sum = tsum_p.sum(axis=0)                 # (N, C)

    dice = 2.0 * (intersection + _SMOOTH) / (x_sum + t_sum + _SMOOTH)  # (N, C)
    per_class = dice.mean(axis=0)                                      # (C,)
    if weights is not None:
        per_class = per_class * jnp.asarray(weights, jnp.float32)
    mean_dice = jnp.sum(per_class) / C
    # TODO(synk): original module returns a Python list built via .item(); we return
    # a device array of per-class dice instead (no kernel equivalent of host sync).
    return mean_dice, per_class


def _reference(inp_f32, target, weights=None):
    """Plain-numpy reproduction of the PyTorch forward, for verification."""
    inp_f32 = np.asarray(inp_f32, np.float32)
    target = np.asarray(target)
    if target.ndim == 4:
        target = target[:, 0]
    N, C, H, W = inp_f32.shape
    per_class = []
    for i in range(C):
        x = inp_f32[:, i].reshape(N, -1)
        t = (target == i).astype(np.float32).reshape(N, -1)
        inter = (x * t).sum(1)
        dice = 2.0 * (inter + _SMOOTH) / (x.sum(1) + t.sum(1) + _SMOOTH)
        d = dice.mean()
        if weights is not None:
            d = d * float(weights[i])
        per_class.append(float(d))
    return sum(per_class) / C, per_class


if __name__ == "__main__":
    key = jax.random.PRNGKey(0)
    k_inp, k_tgt = jax.random.split(key)

    N, C, H, W = 2, 4, 16, 16
    logits = jax.random.normal(k_inp, (N, C, H, W), dtype=jnp.float32)
    # Feed bf16 probabilities (halves the dominant HBM traffic); kernel casts per-tile.
    inp = jax.nn.softmax(logits, axis=1).astype(jnp.bfloat16)
    # Labels provided as int8 (4x less label DMA), PyTorch-style (N, 1, H, W).
    target = jax.random.randint(k_tgt, (N, 1, H, W), 0, C, dtype=jnp.int32).astype(jnp.int8)

    mean_dice, per_class = multiclass_dice(inp, target)
    mean_dice = jax.block_until_ready(mean_dice)
    per_class = jax.block_until_ready(per_class)

    ref_inp = np.asarray(inp.astype(jnp.float32))      # same bf16-rounded values
    ref_mean, ref_per_class = _reference(ref_inp, np.asarray(target))
    np.testing.assert_allclose(np.asarray(per_class), np.asarray(ref_per_class),
                               rtol=1e-3, atol=1e-5)
    np.testing.assert_allclose(float(mean_dice), ref_mean, rtol=1e-3, atol=1e-5)

    print("KERNEL_OK")
</pallas_src>

<mosaic_0001>
module attributes {stable_mosaic.version = 11 : i64} {
  func.func @_dice_partials_kernel(%arg0: i32, %arg1: i32, %arg2: memref<2x4x256xbf16, #tpu.memory_space<vmem>>, %arg3: memref<2x256xi8, #tpu.memory_space<vmem>>, %arg4: memref<1x2x4xf32, #tpu.memory_space<vmem>>, %arg5: memref<1x2x4xf32, #tpu.memory_space<vmem>>, %arg6: memref<1x2x4xf32, #tpu.memory_space<vmem>>) attributes {dimension_semantics = [#tpu.dimension_semantics<parallel>, #tpu.dimension_semantics<arbitrary>], iteration_bounds = array<i64: 1, 1>, scalar_prefetch = 0 : i64, scratch_operands = 0 : i64, tpu.core_type = #tpu.core_type<tc>, window_params = [{transform_indices = @transform_0, window_bounds = array<i64: 2, 4, 256>}, {transform_indices = @transform_1, window_bounds = array<i64: 2, 256>}, {transform_indices = @transform_2, window_bounds = array<i64: 1, 2, 4>}, {transform_indices = @transform_3, window_bounds = array<i64: 1, 2, 4>}, {transform_indices = @transform_4, window_bounds = array<i64: 1, 2, 4>}]} {
    %c0_i32 = arith.constant 0 : i32
    %0 = arith.cmpi eq, %arg1, %c0_i32 : i32
    %1 = arith.extui %0 : i1 to i32
    %c0_i32_0 = arith.constant 0 : i32
    %2 = arith.cmpi ne, %1, %c0_i32_0 : i32
    scf.if %2 {
      %cst_28 = arith.constant 0.000000e+00 : f32
      %31 = vector.broadcast %cst_28 : f32 to vector<1x2x4xf32>
      %c0_29 = arith.constant 0 : index
      %c0_30 = arith.constant 0 : index
      %c0_31 = arith.constant 0 : index
      %32 = vector.load %arg4[%c0_29, %c0_30, %c0_31] : memref<1x2x4xf32, #tpu.memory_space<vmem>>, vector<1x2x4xf32>
      tpu.vector_store %arg4[%c0_29, %c0_30, %c0_31], %31 {strides = array<i32>} : memref<1x2x4xf32, #tpu.memory_space<vmem>>, vector<1x2x4xf32>,
      %cst_32 = arith.constant 0.000000e+00 : f32
      %33 = vector.broadcast %cst_32 : f32 to vector<1x2x4xf32>
      %c0_33 = arith.constant 0 : index
      %c0_34 = arith.constant 0 : index
      %c0_35 = arith.constant 0 : index
      %34 = vector.load %arg5[%c0_33, %c0_34, %c0_35] : memref<1x2x4xf32, #tpu.memory_space<vmem>>, vector<1x2x4xf32>
      tpu.vector_store %arg5[%c0_33, %c0_34, %c0_35], %33 {strides = array<i32>} : memref<1x2x4xf32, #tpu.memory_space<vmem>>, vector<1x2x4xf32>,
      %cst_36 = arith.constant 0.000000e+00 : f32
      %35 = vector.broadcast %cst_36 : f32 to vector<1x2x4xf32>
      %c0_37 = arith.constant 0 : index
      %c0_38 = arith.constant 0 : index
      %c0_39 = arith.constant 0 : index
      %36 = vector.load %arg6[%c0_37, %c0_38, %c0_39] : memref<1x2x4xf32, #tpu.memory_space<vmem>>, vector<1x2x4xf32>
      tpu.vector_store %arg6[%c0_37, %c0_38, %c0_39], %35 {strides = array<i32>} : memref<1x2x4xf32, #tpu.memory_space<vmem>>, vector<1x2x4xf32>,
    } else {
    }
    %c0 = arith.constant 0 : index
    %c0_1 = arith.constant 0 : index
    %c0_2 = arith.constant 0 : index
    %3 = vector.load %arg2[%c0, %c0_1, %c0_2] : memref<2x4x256xbf16, #tpu.memory_space<vmem>>, vector<2x4x256xbf16>
    %4 = arith.extf %3 : vector<2x4x256xbf16> to vector<2x4x256xf32>
    %c0_3 = arith.constant 0 : index
    %c0_4 = arith.constant 0 : index
    %5 = vector.load %arg3[%c0_3, %c0_4] : memref<2x256xi8, #tpu.memory_space<vmem>>, vector<2x256xi8>
    %6 = arith.extsi %5 : vector<2x256xi8> to vector<2x256xi32>
    %7 = tpu.iota {dimensions = array<i32: 1>} : vector<2x4x256xi32>
    %8 = vector.shape_cast %6 : vector<2x256xi32> to vector<2x1x256xi32>
    %9 = vector.broadcast %8 : vector<2x1x256xi32> to vector<2x4x256xi32>
    %10 = arith.cmpi eq, %9, %7 : vector<2x4x256xi32>
    %c0_5 = arith.constant 0 : index
    %c0_6 = arith.constant 0 : index
    %c0_7 = arith.constant 0 : index
    %11 = vector.load %arg4[%c0_5, %c0_6, %c0_7] : memref<1x2x4xf32, #tpu.memory_space<vmem>>, vector<1x2x4xf32>
    %cst = arith.constant 0.000000e+00 : f32
    %12 = vector.broadcast %cst : f32 to vector<2x4x256xf32>
    %13 = arith.select %10, %4, %12 : vector<2x4x256xi1>, vector<2x4x256xf32>
    %cst_8 = arith.constant dense<0.000000e+00> : vector<2x4xf32>
    %14 = vector.multi_reduction <add>, %13, %cst_8 [2] : vector<2x4x256xf32> to vector<2x4xf32>
    %15 = vector.shape_cast %14 : vector<2x4xf32> to vector<1x2x4xf32>
    %16 = arith.addf %11, %15 : vector<1x2x4xf32>
    %c0_9 = arith.constant 0 : index
    %c0_10 = arith.constant 0 : index
    %c0_11 = arith.constant 0 : index
    %17 = vector.load %arg4[%c0_9, %c0_10, %c0_11] : memref<1x2x4xf32, #tpu.memory_space<vmem>>, vector<1x2x4xf32>
    tpu.vector_store %arg4[%c0_9, %c0_10, %c0_11], %16 {strides = array<i32>} : memref<1x2x4xf32, #tpu.memory_space<vmem>>, vector<1x2x4xf32>,
    %c0_12 = arith.constant 0 : index
    %c0_13 = arith.constant 0 : index
    %c0_14 = arith.constant 0 : index
    %18 = vector.load %arg5[%c0_12, %c0_13, %c0_14] : memref<1x2x4xf32, #tpu.memory_space<vmem>>, vector<1x2x4xf32>
    %cst_15 = arith.constant dense<0.000000e+00> : vector<2x4xf32>
    %19 = vector.multi_reduction <add>, %4, %cst_15 [2] : vector<2x4x256xf32> to vector<2x4xf32>
    %20 = vector.shape_cast %19 : vector<2x4xf32> to vector<1x2x4xf32>
    %21 = arith.addf %18, %20 : vector<1x2x4xf32>
    %c0_16 = arith.constant 0 : index
    %c0_17 = arith.constant 0 : index
    %c0_18 = arith.constant 0 : index
    %22 = vector.load %arg5[%c0_16, %c0_17, %c0_18] : memref<1x2x4xf32, #tpu.memory_space<vmem>>, vector<1x2x4xf32>
    tpu.vector_store %arg5[%c0_16, %c0_17, %c0_18], %21 {strides = array<i32>} : memref<1x2x4xf32, #tpu.memory_space<vmem>>, vector<1x2x4xf32>,
    %c0_19 = arith.constant 0 : index
    %c0_20 = arith.constant 0 : index
    %c0_21 = arith.constant 0 : index
    %23 = vector.load %arg6[%c0_19, %c0_20, %c0_21] : memref<1x2x4xf32, #tpu.memory_space<vmem>>, vector<1x2x4xf32>
    %cst_22 = arith.constant 1.000000e+00 : f32
    %cst_23 = arith.constant 0.000000e+00 : f32
    %24 = vector.broadcast %cst_22 : f32 to vector<2x4x256xf32>
    %25 = vector.broadcast %cst_23 : f32 to vector<2x4x256xf32>
    %26 = arith.select %10, %24, %25 : vector<2x4x256xi1>, vector<2x4x256xf32>
    %cst_24 = arith.constant dense<0.000000e+00> : vector<2x4xf32>
    %27 = vector.multi_reduction <add>, %26, %cst_24 [2] : vector<2x4x256xf32> to vector<2x4xf32>
    %28 = vector.shape_cast %27 : vector<2x4xf32> to vector<1x2x4xf32>
    %29 = arith.addf %23, %28 : vector<1x2x4xf32>
    %c0_25 = arith.constant 0 : index
    %c0_26 = arith.constant 0 : index
    %c0_27 = arith.constant 0 : index
    %30 = vector.load %arg6[%c0_25, %c0_26, %c0_27] : memref<1x2x4xf32, #tpu.memory_space<vmem>>, vector<1x2x4xf32>
    tpu.vector_store %arg6[%c0_25, %c0_26, %c0_27], %29 {strides = array<i32>} : memref<1x2x4xf32, #tpu.memory_space<vmem>>, vector<1x2x4xf32>,
    return
  }
  func.func @transform_0(%arg0: i32, %arg1: i32) -> (i32, i32, i32) {
    %c1_i32 = arith.constant 1 : i32
    %0 = arith.muli %arg0, %c1_i32 : i32
    %1 = arith.addi %0, %arg1 : i32
    %c0_i32 = arith.constant 0 : i32
    %c0_i32_0 = arith.constant 0 : i32
    %c0_i32_1 = arith.constant 0 : i32
    return %c0_i32, %c0_i32_0, %1 : i32, i32, i32
  }
  func.func @transform_1(%arg0: i32, %arg1: i32) -> (i32, i32) {
    %c1_i32 = arith.constant 1 : i32
    %0 = arith.muli %arg0, %c1_i32 : i32
    %1 = arith.addi %0, %arg1 : i32
    %c0_i32 = arith.constant 0 : i32
    %c0_i32_0 = arith.constant 0 : i32
    return %c0_i32, %1 : i32, i32
  }
  func.func @transform_2(%arg0: i32, %arg1: i32) -> (i32, i32, i32) {
    %c0_i32 = arith.constant 0 : i32
    %c0_i32_0 = arith.constant 0 : i32
    %c0_i32_1 = arith.constant 0 : i32
    return %arg0, %c0_i32, %c0_i32_0 : i32, i32, i32
  }
  func.func @transform_3(%arg0: i32, %arg1: i32) -> (i32, i32, i32) {
    %c0_i32 = arith.constant 0 : i32
    %c0_i32_0 = arith.constant 0 : i32
    %c0_i32_1 = arith.constant 0 : i32
    return %arg0, %c0_i32, %c0_i32_0 : i32, i32, i32
  }
  func.func @transform_4(%arg0: i32, %arg1: i32) -> (i32, i32, i32) {
    %c0_i32 = arith.constant 0 : i32
    %c0_i32_0 = arith.constant 0 : i32
    %c0_i32_1 = arith.constant 0 : i32
    return %arg0, %c0_i32, %c0_i32_0 : i32, i32, i32
  }
}

</mosaic_0001>

<bundles_post_ra>
// kernel: tpu_custom_call.1
= control target key start
LH: loop header
LB: loop body
LE: loop exit
PB: predicated region body
PF: predicated region fallthrough
CT: control target
= control target key end

     0   :  { %10 = vsyncpa [#allocation3], 0  ;;  %s471_s0 = inlined_call_operand.hbm [shape: bf16[2,4,256], index: 0, kind: input, shape index: {}]   ;;  %s472_s1 = inlined_call_operand.vmem [shape: s8[2,256], index: 1, kind: input, shape index: {}]   ;;  %s473_s2 = inlined_call_operand.hbm [shape: f32[1,2,4], index: 2, kind: output, shape index: {0}]   ;;  %s474_s3 = inlined_call_operand.hbm [shape: f32[1,2,4], index: 3, kind: output, shape index: {1}]   ;;  %s475_s4 = inlined_call_operand.hbm [shape: f32[1,2,4], index: 4, kind: output, shape index: {2}]  }
   0x1   :  { %11 = vsyncpa [#allocation4], 0 }
   0x2   :  { %12 = vsyncpa [#allocation7], 0  ;;  %s358_s15 = smov [#allocation2]   ;;  %s264_s19 = scalar_lea.hbm %s471_s0, 128 }
   0x3   :  { %s22_s16 = sshll.u32 %s358_s15, 4  ;;  %p265_p0 = scmp.ne.s32.totalorder %s471_s0, %s264_s19  ;;  %s23_s16 = int_to_ptr.vmem [resolvable:$true] %s22_s16 }
   0x4   :  { %p268_p1 = scmp.lt.u32.totalorder %s264_s19, %s471_s0 }
   0x6   :  { %p270_p2 = pnand %p268_p1, %p265_p0 }
   0x8   :  { %273 = shalt.err (!%p270_p2)
}
   0x9   :  { %s274_s24 = scalar_lea.vmem %s23_s16, 128  ;;  %p279_p4 = scmp.lt.s32.totalorder %s23_s16, %s23_s16 }
   0xa   :  { %p275_p3 = scmp.ne.s32.totalorder %s23_s16, %s274_s24  ;;  %p280_p5 = scmp.lt.s32.totalorder %s274_s24, %s274_s24 }
   0xc   :  { %p281_p6 = por %p280_p5, %p279_p4 }
   0xe   :  { %p282_p7 = pnand %p281_p6, %p275_p3 }
  0x10   :  { %285 = shalt.err (!%p282_p7)
}
  0x11   :  { %s359_s25 = smov 64   ;;  %s360_s26 = smov 4  }
  0x12   :  { %28 = dma.hbm_to_vmem [thread:$0]  %s471_s0, 128, %s23_s16, [#allocation3], %s359_s25, %s359_s25, %s360_s26  }
  0x13   :  { %352 = dma.done.wait [#allocation3], 128  }
  0x14   :  { %353 = vsyncadd [#allocation3], 4294967168  ;;  %v69_v0 = vlaneseq  ;;  %v361_v1 = vmov 1966171168   ;;  %v253_v7 = vld [vmem:[#allocation2] sm:$0xff]   ;;  %vm124_vm0 = vcmask 1043456  }
  0x15   :  { %v72_v2 = vunpack.c.l.s4 %v361_v1  ;;  %v67_v8 = vld [vmem:[%s472_s1] sm:$0x3]  ;;  %v254_v10 = vunpack.c.l.bf16 %v253_v7  ;;  %v255_v11 = vunpack.c.h.bf16 %v253_v7  ;;  %v362_v33 = vmov 0.0   ;;  %s363_s0 = smov [#allocation6]  }
  0x16   :  { %v70_v3 = vshrl.u32 %v69_v0, 7  ;;  %v138_v4 = vand.u32 127, %v69_v0  ;;  %v68_v12 = vunpack.c.0.s8 %v67_v8  ;;  %vm59_vm5 = vcmask 25600   ;;  %s223_s1 = sshll.u32 %s363_s0, 4  ;;  %s224_s1 = int_to_ptr.vmem [resolvable:$true] %s223_s1 }
  0x17   :  { %v73_v5 = vunpack.c.0.s8 %v72_v2  ;;  %v116_v13 = vcombine.high %v254_v10, %v254_v10  ;;  %v154_v14 = vsel %vm124_vm0, %v254_v10, 0.0  ;;  %v117_v15 = vcombine.high %v255_v11, %v255_v11  ;;  %61 = vst.msk [vmem:[#allocation6] sm:$0x3] %vm59_vm5, %v362_v33  ;;  %60 = vst.msk [vmem:[#allocation5] sm:$0x3] %vm59_vm5, %v362_v33  ;;  %s286_s5 = scalar_lea.vmem %s224_s1, 32  ;;  %p291_p9 = scmp.lt.s32.totalorder %s224_s1, %s224_s1 }
  0x18   :  { %v403_v6 = vsub.s32 %v138_v4, %v70_v3  ;;  %v95_v17 = vsub.s32 0, %v70_v3  ;;  %v99_v18 = vsub.s32 1, %v70_v3  ;;  %v159_v20 = vsel %vm124_vm0, %v255_v11, 0.0  ;;  %62 = vst.msk [vmem:[#allocation8] sm:$0x3] %vm59_vm5, %v362_v33  ;;  %p287_p8 = scmp.ne.s32.totalorder %s224_s1, %s286_s5  ;;  %p292_p10 = scmp.lt.s32.totalorder %s286_s5, %s286_s5 }
  0x19   :  { %v76_v9 = vsub.s32 %v73_v5, %v70_v3  ;;  %v155_v19 = vsel %vm124_vm0, %v116_v13, 0.0  ;;  %v160_v21 = vsel %vm124_vm0, %v117_v15, 0.0  ;;  %vm147_vm6 = vcmask 1041409  }
  0x1a   :  { %v156_v22 = vadd.f32 %v155_v19, %v154_v14  ;;  %v161_v25 = vadd.f32 %v160_v21, %v159_v20  ;;  %p293_p11 = por %p292_p10, %p291_p9 }
  0x1b   :  { %v77_v16 = vrot.slane %v68_v12, %v76_v9 }
  0x1c   :  { %157 = vadd.xlane.f32.xlu0 %v156_v22  ;;  %p294_p12 = pnand %p293_p11, %p287_p8 }
  0x1d   :  { %v85_v23 = vrot.slane %v77_v16, %v76_v9  ;;  %v78_v24 = vcombine.high %v77_v16, %v77_v16 }
  0x1e   :  { %v153_v55 = vld [vmem:[#allocation6] sm:$0x3] }
  0x1f   :  { %v96_v26 = vrot.slane %v85_v23, %v95_v17  ;;  %v100_v27 = vrot.slane %v85_v23, %v99_v18  ;;  %v92_v28 = vrot.slane %v78_v24, %v76_v9 }
  0x20   :  { %162 = vadd.xlane.f32.xlu0 %v161_v25 }
  0x21   :  { %vm109_vm1 = vcmp.eq.s32.totalorder %v96_v26, %v70_v3  ;;  %vm110_vm2 = vcmp.eq.s32.totalorder %v100_v27, %v70_v3  ;;  %v104_v29 = vrot.slane %v92_v28, %v95_v17  ;;  %v108_v30 = vrot.slane %v92_v28, %v99_v18 }
  0x22   :  { %v120_v31 = vsel %vm109_vm1, %v254_v10, 0.0  ;;  %v121_v32 = vsel %vm110_vm2, %v116_v13, 0.0  ;;  %v179_v34 = vsel %vm109_vm1, 1.0, %v362_v33  ;;  %v180_v35 = vsel %vm110_vm2, 1.0, %v362_v33 }
  0x23   :  { %v125_v36 = vsel %vm124_vm0, %v120_v31, 0.0  ;;  %v126_v37 = vsel %vm124_vm0, %v121_v32, 0.0  ;;  %vm111_vm3 = vcmp.eq.s32.totalorder %v104_v29, %v70_v3  ;;  %vm112_vm4 = vcmp.eq.s32.totalorder %v108_v30, %v70_v3 }
  0x24   :  { %v127_v38 = vadd.f32 %v126_v37, %v125_v36  ;;  %v122_v39 = vsel %vm111_vm3, %v255_v11, 0.0  ;;  %v123_v40 = vsel %vm112_vm4, %v117_v15, 0.0  ;;  %v183_v41 = vsel %vm124_vm0, %v179_v34, 0.0 }
  0x25   :  { %v130_v42 = vsel %vm124_vm0, %v122_v39, 0.0  ;;  %v131_v43 = vsel %vm124_vm0, %v123_v40, 0.0  ;;  %v184_v44 = vsel %vm124_vm0, %v180_v35, 0.0  ;;  %v181_v45 = vsel %vm111_vm3, 1.0, %v362_v33 }
  0x26   :  { %128 = vadd.xlane.f32.xlu1 %v127_v38  ;;  %v132_v46 = vadd.f32 %v131_v43, %v130_v42  ;;  %v185_v47 = vadd.f32 %v184_v44, %v183_v41  ;;  %v182_v48 = vsel %vm112_vm4, 1.0, %v362_v33  ;;  %v188_v49 = vsel %vm124_vm0, %v181_v45, 0.0 }
  0x27   :  { %v189_v50 = vsel %vm124_vm0, %v182_v48, 0.0 }
  0x28   :  { %186 = vadd.xlane.f32.xlu0 %v185_v47  ;;  %v190_v51 = vadd.f32 %v189_v50, %v188_v49 }
  0x2a   :  { %133 = vadd.xlane.f32.xlu1 %v132_v46 }
  0x2e   :  { %191 = vadd.xlane.f32.xlu1 %v190_v51 }
  0xa9   :  { %v158_v52 = vpop.xlane.xlu0 %157 }
  0xaa   :  { %v169_v53 = vrot.slane %v158_v52, %v403_v6 }
  0xad   :  { %v163_v54 = vpop.xlane.xlu0 %162 }
  0xae   :  { %v173_v56 = vrot.slane %v163_v54, %v403_v6 }
  0xb0   :  { %v174_v57 = vsel %vm147_vm6, %v173_v56, %v169_v53 }
  0xb1   :  { %v176_v59 = vadd.f32 %v174_v57, %v153_v55 }
  0xb3   :  { %v129_v58 = vpop.xlane.xlu1 %128  ;;  %177 = vst.msk [vmem:[#allocation6] sm:$0x3] %vm59_vm5, %v176_v59 }
  0xb5   :  { %v187_v61 = vpop.xlane.xlu0 %186 }
  0xb7   :  { %v134_v60 = vpop.xlane.xlu1 %133 }
  0xb8   :  { %297 = shalt.err (!%p294_p12)
}
  0xb9   :  { %s298_s8 = scalar_lea.hbm %s474_s3, 32 }
  0xba   :  { %p299_p13 = scmp.ne.s32.totalorder %s474_s3, %s298_s8  ;;  %p302_p0 = scmp.lt.u32.totalorder %s298_s8, %s474_s3 }
  0xbc   :  { %p304_p1 = pnand %p302_p0, %p299_p13 }
  0xbe   :  { %307 = shalt.err (!%p304_p1)
}
  0xbf   :  { %226 = dma.vmem_to_hbm [thread:$0]  %s224_s1, 32, %s474_s3, [#allocation7]   ;;  %v142_v62 = vrot.slane %v129_v58, %v403_v6  ;;  %v113_v63 = vld [vmem:[#allocation5] sm:$0x3]  ;;  %v146_v0 = vrot.slane %v134_v60, %v403_v6  ;;  %v198_v2 = vrot.slane %v187_v61, %v403_v6  ;;  %v192_v4 = vpop.xlane.xlu1 %191  ;;  %v178_v5 = vld [vmem:[#allocation8] sm:$0x3] }
  0xc0   :  { %s364_s15 = smov [#allocation5]   ;;  %v202_v7 = vrot.slane %v192_v4, %v403_v6  ;;  %s365_s17 = smov [#allocation8]  }
  0xc1   :  { %s213_s16 = sshll.u32 %s364_s15, 4  ;;  %v148_v1 = vsel %vm147_vm6, %v146_v0, %v142_v62  ;;  %s233_s18 = sshll.u32 %s365_s17, 4  ;;  %s214_s16 = int_to_ptr.vmem [resolvable:$true] %s213_s16  ;;  %s234_s18 = int_to_ptr.vmem [resolvable:$true] %s233_s18 }
  0xc2   :  { %v150_v3 = vadd.f32 %v148_v1, %v113_v63  ;;  %v203_v8 = vsel %vm147_vm6, %v202_v7, %v198_v2  ;;  %s308_s3 = scalar_lea.vmem %s214_s16, 32  ;;  %p313_p3 = scmp.lt.s32.totalorder %s214_s16, %s214_s16 }
  0xc3   :  { %p309_p2 = scmp.ne.s32.totalorder %s214_s16, %s308_s3  ;;  %p314_p4 = scmp.lt.s32.totalorder %s308_s3, %s308_s3 }
  0xc4   :  { %152 = vst.msk [vmem:[#allocation5] sm:$0x3] %vm59_vm5, %v150_v3 }
  0xc5   :  { %p315_p5 = por %p314_p4, %p313_p3 }
  0xc7   :  { %p316_p6 = pnand %p315_p5, %p309_p2 }
  0xc9   :  { %319 = shalt.err (!%p316_p6)
}
  0xca   :  { %s320_s21 = scalar_lea.hbm %s473_s2, 32 }
  0xcb   :  { %p321_p7 = scmp.ne.s32.totalorder %s473_s2, %s320_s21  ;;  %p324_p8 = scmp.lt.u32.totalorder %s320_s21, %s473_s2 }
  0xcd   :  { %p326_p9 = pnand %p324_p8, %p321_p7 }
  0xcf   :  { %329 = shalt.err (!%p326_p9)
}
  0xd0   :  { %216 = dma.vmem_to_hbm [thread:$0]  %s214_s16, 32, %s473_s2, [#allocation4]   ;;  %v205_v6 = vadd.f32 %v203_v8, %v178_v5 }
  0xd1   :  { %s330_s28 = scalar_lea.vmem %s234_s18, 32  ;;  %p335_p11 = scmp.lt.s32.totalorder %s234_s18, %s234_s18 }
  0xd2   :  { %206 = vst.msk [vmem:[#allocation8] sm:$0x3] %vm59_vm5, %v205_v6  ;;  %p331_p10 = scmp.ne.s32.totalorder %s234_s18, %s330_s28  ;;  %p336_p12 = scmp.lt.s32.totalorder %s330_s28, %s330_s28 }
  0xd4   :  { %p337_p13 = por %p336_p12, %p335_p11 }
  0xd6   :  { %p338_p0 = pnand %p337_p13, %p331_p10 }
  0xd8   :  { %341 = shalt.err (!%p338_p0)
}
  0xd9   :  { %s342_s0 = scalar_lea.hbm %s475_s4, 32 }
  0xda   :  { %p343_p1 = scmp.ne.s32.totalorder %s475_s4, %s342_s0  ;;  %p346_p2 = scmp.lt.u32.totalorder %s342_s0, %s475_s4 }
  0xdc   :  { %p348_p3 = pnand %p346_p2, %p343_p1 }
  0xde   :  { %351 = shalt.err (!%p348_p3)
}
  0xdf   :  { %236 = dma.vmem_to_hbm [thread:$0]  %s234_s18, 32, %s475_s4, [#allocation7]  }
  0xe0   :  { %354 = dma.done.wait [#allocation4], 32  }
  0xe1   :  { %355 = vsyncadd [#allocation4], 4294967264 }
  0xe2   :  { %356 = dma.done.wait [#allocation7], 64  }
  0xe3   :  { %357 = vsyncadd [#allocation7], 4294967232 }
  0xe4   :  { %246 = vsyncpa [#allocation3], 1 }
  0xe5   :  { %247 = vsyncpa [#allocation4], 1 }
  0xe6   :  { %248 = vsyncpa [#allocation7], 1 }

</bundles_post_ra>
